<compile_context>
chip_gen: v7x
topology: tpu7x:2x2x1
jax: 0.10.0
libtpu: 0.0.40
codegen_flags: <defaults>
</compile_context>

<pallas_src>
import math

import jax
import jax.numpy as jnp
from jax.experimental import pallas as pl
from jax.experimental.pallas import tpu as pltpu


def _normalize(v):
    return list(v) if isinstance(v, (list, tuple)) else [v, v]


def _same_pads(in_h, in_w, kernel_size, stride):
    """Per-side TF-SAME pads, identical math to the PyTorch module."""
    out_h = math.ceil(float(in_h) / float(stride[0]))
    out_w = math.ceil(float(in_w) / float(stride[1]))
    pad_along_h = (out_h - 1) * stride[0] + kernel_size[0] - in_h
    pad_along_w = (out_w - 1) * stride[1] + kernel_size[1] - in_w
    pad_top = math.floor(pad_along_h / 2)
    pad_left = math.floor(pad_along_w / 2)
    pad_bottom = pad_along_h - pad_top
    pad_right = pad_along_w - pad_left
    return pad_top, pad_bottom, pad_left, pad_right


def _round_up(a, b):
    return -(-a // b) * b


def _sublane(dtype):
    # sublane packing: 8 rows for 4-byte, 16 for 2-byte, 32 for 1-byte dtypes
    return max(8, 32 // jnp.dtype(dtype).itemsize)


def _vmem_info():
    try:
        cap = int(pltpu.get_tpu_info().vmem_capacity_bytes)
    except Exception:
        cap = 64 * 1024 * 1024  # conservative (v7x per-TensorCore physical)
    # Budget for the whole double-buffered in+out footprint (plus the padded
    # value built inside the kernel): ~1/4 of physical, capped well below
    # v5e's default scoped VMEM headroom once we raise vmem_limit_bytes.
    budget = min(cap // 4, 12 * 1024 * 1024)
    return cap, budget


def _vmem_limit(cap, footprint):
    # Explicit scoped-VMEM limit consistent with the chosen budget.
    return int(min(cap // 2, max(footprint + (4 << 20), 32 << 20)))


def _choose_rows(R, per_row_bytes, budget, pref_steps=8, row_multiple=1):
    """Pick block row count: fit VMEM budget, keep >= pref_steps grid steps."""
    cap_vmem = max(1, budget // max(per_row_bytes, 1))
    cap_steps = max(1, R // pref_steps)          # >= pref_steps steps when R >= pref_steps
    br = max(1, min(cap_vmem, cap_steps, R))
    if row_multiple > 1:
        # 2D blocks: second-minor block dim must be a multiple of the sublane
        # count or equal the full array dim.
        if br >= R or R <= row_multiple:
            br = R
        else:
            br = max(row_multiple, (br // row_multiple) * row_multiple)
    return min(br, R)


def _flat_pad_kernel_factory(top_len, bot_len, dtype):
    """2D lane-dense path: rows are (N*C), lanes are flattened H*W."""
    def kernel(x_ref, o_ref):
        x = x_ref[...]
        b = x.shape[0]
        parts = []
        if top_len:
            parts.append(jnp.zeros((b, top_len), dtype))
        parts.append(x)
        if bot_len:
            parts.append(jnp.zeros((b, bot_len), dtype))
        o_ref[...] = jnp.concatenate(parts, axis=-1) if len(parts) > 1 else x
    return kernel


def _hw_pad_kernel_factory(pt, pb, pleft, pright, H, W, dtype):
    """General 3D path: build padded block as one value, single store."""
    W_out = W + pleft + pright

    def kernel(x_ref, o_ref):
        x = x_ref[...]
        b = x.shape[0]
        if pleft or pright:
            parts = []
            if pleft:
                parts.append(jnp.zeros((b, H, pleft), dtype))
            parts.append(x)
            if pright:
                parts.append(jnp.zeros((b, H, pright), dtype))
            x = jnp.concatenate(parts, axis=-1)
        if pt or pb:
            parts = []
            if pt:
                parts.append(jnp.zeros((b, pt, W_out), dtype))
            parts.append(x)
            if pb:
                parts.append(jnp.zeros((b, pb, W_out), dtype))
            x = jnp.concatenate(parts, axis=-2)
        o_ref[...] = x
    return kernel


def conv2d_same_pad(x, kernel_size, stride):
    """TF 'SAME' padding semantics, identical to PyTorch Conv2dSamePad.forward."""
    kernel_size = _normalize(kernel_size)
    stride = _normalize(stride)

    N, C, in_h, in_w = x.shape
    pad_top, pad_bottom, pad_left, pad_right = _same_pads(in_h, in_w, kernel_size, stride)

    # F.pad with a negative pad crops that side; handle it in the wrapper so
    # the kernel only ever sees non-negative pads (rare corner case).
    if min(pad_top, pad_bottom, pad_left, pad_right) < 0:
        ct, cb = max(0, -pad_top), max(0, -pad_bottom)
        cl, cr = max(0, -pad_left), max(0, -pad_right)
        x = x[:, :, ct:in_h - cb, cl:in_w - cr]
        in_h -= ct + cb
        in_w -= cl + cr
        pad_top, pad_bottom = max(0, pad_top), max(0, pad_bottom)
        pad_left, pad_right = max(0, pad_left), max(0, pad_right)

    H_out = in_h + pad_top + pad_bottom
    W_out = in_w + pad_left + pad_right
    dtype = x.dtype
    itemsize = jnp.dtype(dtype).itemsize
    sub = _sublane(dtype)
    vmem_cap, vmem_budget = _vmem_info()

    R = N * C  # fold batch and channels into one row axis (coarser blocks)
    in_bytes = N * C * in_h * in_w * itemsize
    out_bytes = N * C * H_out * W_out * itemsize
    cost = pl.CostEstimate(flops=0, transcendentals=0,
                           bytes_accessed=in_bytes + out_bytes)

    if pad_left == 0 and pad_right == 0:
        # ---- Lane-dense path: trailing dim is H*W (contiguous slab per row).
        L_in = in_h * in_w
        L_out = H_out * in_w
        lanes_in = _round_up(L_in, 128)
        lanes_out = _round_up(L_out, 128)
        # 2x double-buffered in + 2x double-buffered out + ~1x each for the
        # value built inside the kernel -> 3x(in + out), tiled-layout bytes.
        per_row = 3 * (lanes_in + lanes_out) * itemsize
        br = _choose_rows(R, per_row, vmem_budget, row_multiple=sub)
        footprint = 3 * _round_up(br, sub) * (lanes_in + lanes_out) * itemsize

        kernel = _flat_pad_kernel_factory(pad_top * in_w, pad_bottom * in_w, dtype)
        out2 = pl.pallas_call(
            kernel,
            out_shape=jax.ShapeDtypeStruct((R, L_out), dtype),
            grid=(pl.cdiv(R, br),),
            in_specs=[pl.BlockSpec((br, L_in), lambda r: (r, 0))],
            out_specs=pl.BlockSpec((br, L_out), lambda r: (r, 0)),
            compiler_params=pltpu.CompilerParams(
                dimension_semantics=("parallel",),
                vmem_limit_bytes=_vmem_limit(vmem_cap, footprint)),
            cost_estimate=cost,
        )(x.reshape(R, L_in))
        return out2.reshape(N, C, H_out, W_out)

    # ---- General path: left/right pad present, keep (rows, H, W) blocks.
    row_in = _round_up(in_h, sub) * _round_up(in_w, 128) * itemsize
    row_out = _round_up(H_out, sub) * _round_up(W_out, 128) * itemsize
    per_row = 3 * (row_in + row_out)
    br = _choose_rows(R, per_row, vmem_budget, row_multiple=1)
    footprint = 3 * br * (row_in + row_out)

    kernel = _hw_pad_kernel_factory(pad_top, pad_bottom, pad_left, pad_right,
                                    in_h, in_w, dtype)
    out3 = pl.pallas_call(
        kernel,
        out_shape=jax.ShapeDtypeStruct((R, H_out, W_out), dtype),
        grid=(pl.cdiv(R, br),),
        # Last two block dims equal the full array dims -> no (8,128) issue.
        in_specs=[pl.BlockSpec((br, in_h, in_w), lambda r: (r, 0, 0))],
        out_specs=pl.BlockSpec((br, H_out, W_out), lambda r: (r, 0, 0)),
        compiler_params=pltpu.CompilerParams(
            dimension_semantics=("parallel",),
            vmem_limit_bytes=_vmem_limit(vmem_cap, footprint)),
        cost_estimate=cost,
    )(x.reshape(R, in_h, in_w))
    return out3.reshape(N, C, H_out, W_out)


if __name__ == "__main__":
    key = jax.random.PRNGKey(0)
    x = jax.random.normal(key, (2, 4, 16, 16), dtype=jnp.float32)

    # Cover all interesting pad patterns:
    #   (3, 2)           -> pad_h = pad_w = 1 : top/left = 0, bottom/right = 1
    #   (3, 1)           -> pad_h = pad_w = 2 : nonzero pad_top and pad_left
    #   ((5,2), (2,3))   -> pad_h = 3 (top=1, bottom=2), pad_w = 1 (left=0, right=1)
    #   (2, 2)           -> no padding at all (lane-dense pure-copy path)
    configs = [
        (3, 2),
        (3, 1),
        ((5, 2), (2, 3)),
        (2, 2),
    ]

    for kernel_size, stride in configs:
        ks = _normalize(kernel_size)
        st = _normalize(stride)

        y = jax.block_until_ready(conv2d_same_pad(x, kernel_size, stride))

        pt, pb, plft, prt = _same_pads(x.shape[2], x.shape[3], ks, st)
        ref = jnp.pad(x, ((0, 0), (0, 0), (pt, pb), (plft, prt)))
        assert y.shape == ref.shape, (kernel_size, stride, y.shape, ref.shape)
        assert jnp.array_equal(y, ref), f"mismatch for kernel={kernel_size} stride={stride}"

    print("KERNEL_OK")
</pallas_src>

<mosaic_0001>
module attributes {stable_mosaic.version = 11 : i64} {
  func.func @kernel(%arg0: i32, %arg1: memref<1x16x16xf32, #tpu.memory_space<vmem>>, %arg2: memref<1x17x17xf32, #tpu.memory_space<vmem>>) attributes {dimension_semantics = [#tpu.dimension_semantics<parallel>], iteration_bounds = array<i64: 8>, scalar_prefetch = 0 : i64, scratch_operands = 0 : i64, tpu.core_type = #tpu.core_type<tc>, window_params = [{transform_indices = @transform_0, window_bounds = array<i64: 1, 16, 16>}, {transform_indices = @transform_1, window_bounds = array<i64: 1, 17, 17>}]} {
    %c0 = arith.constant 0 : index
    %c0_0 = arith.constant 0 : index
    %c0_1 = arith.constant 0 : index
    %0 = vector.load %arg1[%c0, %c0_0, %c0_1] : memref<1x16x16xf32, #tpu.memory_space<vmem>>, vector<1x16x16xf32>
    %cst = arith.constant 0.000000e+00 : f32
    %1 = vector.broadcast %cst : f32 to vector<1x16x1xf32>
    %2 = tpu.concatenate %0, %1 in 2 : vector<1x16x16xf32>, vector<1x16x1xf32> -> vector<1x16x17xf32>
    %cst_2 = arith.constant 0.000000e+00 : f32
    %3 = vector.broadcast %cst_2 : f32 to vector<1x1x17xf32>
    %4 = tpu.concatenate %2, %3 in 1 : vector<1x16x17xf32>, vector<1x1x17xf32> -> vector<1x17x17xf32>
    %c0_3 = arith.constant 0 : index
    %c0_4 = arith.constant 0 : index
    %c0_5 = arith.constant 0 : index
    %5 = vector.load %arg2[%c0_3, %c0_4, %c0_5] : memref<1x17x17xf32, #tpu.memory_space<vmem>>, vector<1x17x17xf32>
    tpu.vector_store %arg2[%c0_3, %c0_4, %c0_5], %4 {strides = array<i32>} : memref<1x17x17xf32, #tpu.memory_space<vmem>>, vector<1x17x17xf32>,
    return
  }
  func.func @transform_0(%arg0: i32) -> (i32, i32, i32) {
    %c0_i32 = arith.constant 0 : i32
    %c0_i32_0 = arith.constant 0 : i32
    %c0_i32_1 = arith.constant 0 : i32
    return %arg0, %c0_i32, %c0_i32_0 : i32, i32, i32
  }
  func.func @transform_1(%arg0: i32) -> (i32, i32, i32) {
    %c0_i32 = arith.constant 0 : i32
    %c0_i32_0 = arith.constant 0 : i32
    %c0_i32_1 = arith.constant 0 : i32
    return %arg0, %c0_i32, %c0_i32_0 : i32, i32, i32
  }
}

</mosaic_0001>

<bundles_post_ra>
// kernel: tpu_custom_call.1
= control target key start
LH: loop header
LB: loop body
LE: loop exit
PB: predicated region body
PF: predicated region fallthrough
CT: control target
= control target key end

     0   :  { %6 = vsyncpa [#allocation3], 0  ;;  %s457_s0 = inlined_call_operand.hbm [shape: f32[8,16,16], index: 0, kind: input, shape index: {}]   ;;  %s458_s1 = inlined_call_operand.vmem [shape: f32[8,17,17], index: 1, kind: output, shape index: {}]  }
   0x1   :  { %8 = vsyncpa [#allocation3 + $0x1], 0  ;;  %s349_s6 = smov 0   ;;  %s351_s7 = smov 0  }
   0x2   :  { %s353_s8 = smov 0   ;;  %s355_s9 = smov 0  }
   0x3 LB: > { %s368_s10 = sadd.s32 4294967295, %s333_s9   ;;  %s371_s11 = sadd.s32 1, %s333_s9   ;;  %s333_s9 = sphi %s355_s9, %s465_s9   ;;  %s329_s8 = sphi %s353_s8, %s464_s8   ;;  %s325_s7 = sphi %s351_s7, %s463_s7   ;;  %s321_s6 = sphi %s349_s6, %s462_s6  }
   0x4   : > { %s18_s12 = ssub.s32 %s333_s9, %s371_s11  ;;  %s21_s13 = sadd.s32 1, %s329_s8 }
   0x5   : > { %p19_p0 = scmp.eq.s32.totalorder %s18_s12, 0  ;;  %p28_p1 = scmp.ne.s32.totalorder %s329_s8, %s325_s7 }
   0x6   : > { %p29_p2 = scmp.eq.s32.totalorder %s333_s9, 0  ;;  %p34_p3 = scmp.ne.s32.totalorder %s325_s7, %s321_s6 }
   0x7   : > { %s381_s14 = scalar_select %p19_p0, %s329_s8, %s21_s13  }
   0x8   : > { %p30_p4 = por %p29_p2, %p28_p1  ;;  %p35_p5 = scmp.eq.s32.totalorder %s368_s10, 0 }
   0x9   : > { %p233_p6 = scmp.lt.s32.totalorder %s333_s9, 8  ;;  %s84_s16 = sand.u32 1, %s329_s8  }
   0xa   : > { %p385_p7 = por %p35_p5, %p34_p3  ;;  %s217_s17 = sshll.u32 %s84_s16, 4 }
   0xb   : > { %s225_s18 = sshll.u32 %s333_s9, 8  ;;  %s88_s22 = scalar_lea.vmem [#allocation2], %s217_s17 }
   0xc   : > { %s394_s21 = scalar_lea.hbm %s457_s0, %s225_s18  ;;  %s95_s23 = sshll.u32 %s88_s22, 4  ;;  %s396_s23 = int_to_ptr.vmem [resolvable:$true] %s95_s23 }
   0xd   : > { %p398_p8 = pnand %p233_p6, %p30_p4  ;;  %s403_s25 = scalar_lea.sflag [#allocation3], %s84_s16 }
   0xe   : > { %s269_s26 = scalar_lea.hbm %s394_s21, 256  ;;  %s274_s29 = scalar_lea.hbm %s457_s0, 2048 }
   0xf   : > { %p270_p10 = scmp.ne.s32.totalorder %s394_s21, %s269_s26  ;;  %p271_p11 = pneg %p398_p8 }
  0x10   : > { %p275_p0 = scmp.lt.u32.totalorder %s394_s21, %s457_s0  ;;  %p276_p1 = scmp.lt.u32.totalorder %s274_s29, %s269_s26 }
  0x11   : > { %p272_p12 = pnand %p271_p11, %p270_p10  ;;  %p278_p3 = scmp.lt.u32.totalorder %s269_s26, %s394_s21 }
  0x12   : > { %p277_p2 = por %p276_p1, %p275_p0 }
  0x13   : > { %p273_p13 = pneg %p272_p12 }
  0x14   : > { %p279_p4 = por %p278_p3, %p277_p2 }
  0x16   : > { %p280_p5 = pnand %p279_p4, %p273_p13 }
  0x18   : > { %283 = shalt.err (!%p280_p5)
}
  0x19   : > { %s284_s3 = scalar_lea.vmem %s396_s23, 256  ;;  %s335_s4 = smov [#allocation2]  }
  0x1a   : > { %p285_p6 = scmp.ne.s32.totalorder %s396_s23, %s284_s3  ;;  %s289_s5 = sshll.u32 %s335_s4, 4  ;;  %s290_s5 = int_to_ptr.vmem [resolvable:$false] %s289_s5 }
  0x1b   : > { %s291_s6 = scalar_lea.vmem %s290_s5, 512  ;;  %p292_p9 = scmp.lt.s32.totalorder %s396_s23, %s290_s5 }
  0x1c   : > { %p287_p10 = pnand %p285_p6, %p271_p11  ;;  %p293_p0 = scmp.lt.s32.totalorder %s291_s6, %s284_s3 }
  0x1e   : > { %p288_p12 = pneg %p287_p10  ;;  %p294_p1 = por %p293_p0, %p292_p9 }
  0x20   : > { %p295_p2 = pnand %p294_p1, %p288_p12 }
  0x22   : > { %298 = shalt.err (!%p295_p2)
}
  0x23   : > { %s336_s12 = smov 128   ;;  %s337_s13 = smov 8  }
  0x24   : > { %232 = dma.hbm_to_vmem [thread:$0]  (!%p398_p8), %s394_s21, 256, %s396_s23, %s403_s25, %s336_s12, %s336_s12, %s337_s13  }
  0x25   : > { %p103_p11 = scmp.lt.s32.totalorder %s333_s9, 9  ;;  %p461_p13 = scmp.ge.s32.totalorder %s333_s9, 1 }
  0x27   : > { %p104_p3 = pnand %p461_p13, %p103_p11 }
  0x28   : > { %s109_s16 = sand.u32 (!%p104_p3), 1, %s325_s7  }
  0x29   : > { %107 = sbr.rel (%p104_p3) target bundleno = 57 (0x39), region = 24  ;;  %s221_s17 = sshll.u32 (!%p104_p3), %s109_s16, 4 }
  0x2a   : > { %s110_s18 = scalar_lea.sflag (!%p104_p3), [#allocation3], %s109_s16  ;;  %s113_s19 = scalar_lea.vmem (!%p104_p3), [#allocation2], %s221_s17 }
  0x30   : > { %316 = dma.done.wait (%p385_p7), %s110_s18, 256  }
  0x31   : > { %318 = vsyncadd (%p385_p7), %s110_s18, 4294967040  ;;  %p132_p9 = scmp.lt.s32.totalorder %s368_s10, 7  ;;  %vm145_vm0 = vcmask 131072   ;;  %vm139_vm1 = vcmask 130048   ;;  %vm142_vm2 = vcmask 138240   ;;  %v137_v0 = vld [vmem:[%s113_s19] sm:$0xff] }
  0x32   : > { %v138_v1 = vld [vmem:[%s113_s19 + $0x8] sm:$0xff]  ;;  %v338_v2 = vmov 0.0   ;;  %v140_v3 = vsel %vm139_vm1, %v137_v0, 0.0 }
  0x33   : > { %s467_s10 = smov (!%p132_p9, %s368_s10), 7  ;;  %v141_v4 = vsel %vm139_vm1, %v138_v1, 0.0 }
  0x34   : > { %s226_s20 = smul.u32 24, %s467_s10 }
  0x36   : > { %s136_s22 = scalar_lea.vmem %s458_s1, %s226_s20 }
  0x37   : > { %146 = vst.msk [vmem:[%s136_s22 + $0x10] sm:$0x1] %vm145_vm0, %v338_v2 }
  0x38   : > { %143 = vst.msk [vmem:[%s136_s22] sm:$0xff] %vm142_vm2, %v140_v3  ;;  %144 = vst.msk [vmem:[%s136_s22 + $0x8] sm:$0xff] %vm142_vm2, %v141_v4 }
  0x39 PF: > { %p11_p7 = scmp.ge.s32.totalorder %s371_s11, 10   ;;  %s462_s6 = smov %s325_s7 }
  0x3a   : > { %s463_s7 = smov %s329_s8  ;;  %s464_s8 = smov %s381_s14 }
  0x3b   : > { %s465_s9 = smov %s371_s11  ;;  %13 = sbr.rel (!%p11_p7) target bundleno = 3 (0x3), region = 64 }
  0x42   :  { %168 = vsyncpa [#allocation3], 1 }
  0x43   :  { %170 = vsyncpa [#allocation3 + $0x1], 1 }

</bundles_post_ra>
